<compile_context>
chip_gen: v6e
topology: v6e:2x2x1
jax: 0.10.0
libtpu: 0.0.40
codegen_flags: <defaults>
</compile_context>

<pallas_src>
import math

import jax
import jax.numpy as jnp
from jax.experimental import pallas as pl
from jax.experimental.pallas import tpu as pltpu


def _round_up(x, m):
    return ((x + m - 1) // m) * m


def _pad_cast_2d(a, rows, cols, dtype):
    """Cast + zero-pad to (rows, cols); no-op when already that shape/dtype."""
    dtype = jnp.dtype(dtype)
    if a.dtype != dtype:
        a = a.astype(dtype)
    pr, pc = rows - a.shape[0], cols - a.shape[1]
    if pr or pc:
        a = jnp.pad(a, ((0, pr), (0, pc)))
    return a


# --------------------------------------------------------------------------
# Kernel 1: support = x @ W   (row-tiled, fully parallel)
# --------------------------------------------------------------------------
def _support_kernel(x_ref, w_ref, out_ref):
    out_ref[...] = jnp.dot(
        x_ref[...], w_ref[...], preferred_element_type=jnp.float32
    ).astype(out_ref.dtype)


# --------------------------------------------------------------------------
# Kernel 2: out = adj @ support + bias
#   grid = (row tiles [parallel], k tiles [arbitrary / reduction])
# --------------------------------------------------------------------------
def _make_gcn_kernel(k_tile, support_resident, acc_in_out):
    def kernel(adj_ref, sup_ref, b_ref, out_ref, *scratch):
        k = pl.program_id(1)
        acc_ref = out_ref if acc_in_out else scratch[0]

        @pl.when(k == 0)
        def _():
            acc_ref[...] = jnp.zeros_like(acc_ref)

        if support_resident:
            # support is fully VMEM-resident; slice the current k-chunk.
            off = pl.multiple_of(k * k_tile, k_tile)
            sup = sup_ref[pl.ds(off, k_tile), :]
        else:
            sup = sup_ref[...]

        acc_ref[...] += jnp.dot(
            adj_ref[...], sup, preferred_element_type=jnp.float32
        )

        @pl.when(k == pl.num_programs(1) - 1)
        def _():
            if acc_in_out:
                out_ref[...] = out_ref[...] + b_ref[...]
            else:
                out_ref[...] = (acc_ref[...] + b_ref[...]).astype(out_ref.dtype)

    return kernel


# --------------------------------------------------------------------------
# Wrapper
# --------------------------------------------------------------------------
def graph_convolution(x, adj, weight, bias=None, *,
                      row_tile=None, k_tile=None,
                      compute_dtype=jnp.bfloat16,
                      support_resident=None):
    """Fused GCN forward: adj @ (x @ weight) + bias."""
    n, f_in = x.shape
    f_out = weight.shape[1]
    assert adj.shape == (n, n)
    out_dtype = jnp.dtype(x.dtype)

    # ---- dtypes: bf16 inputs by default; f32 accumulation always ----
    in_dtype = jnp.dtype(compute_dtype) if compute_dtype is not None else out_dtype
    sup_dtype = in_dtype

    # ---- tile selection (largest good tile, clamped for small problems) ----
    base = _round_up(n, 128)
    if row_tile is None:
        row_tile = min(512, base)
        # Keep >= 2 row tiles when there is enough work so the "parallel"
        # row axis can shard across both TensorCores on v7x.
        if base >= 256:
            row_tile = min(row_tile, max(128, (base // 2) // 128 * 128))
    if k_tile is None:
        k_tile = min(2048, base)
    row_tile = int(row_tile)
    k_tile = int(k_tile)

    n_row_pad = _round_up(n, row_tile)     # adj rows / output rows
    n_col_pad = _round_up(n, k_tile)       # adj cols = support rows
    f_out_pad = _round_up(f_out, 128)      # lane-dense output

    itm_in = jnp.dtype(in_dtype).itemsize
    itm_sup = jnp.dtype(sup_dtype).itemsize
    itm_out = jnp.dtype(out_dtype).itemsize

    # ---- cast + pad inputs (single fused op each; no-op when aligned) ----
    x_p = _pad_cast_2d(x, n_col_pad, f_in, in_dtype)
    adj_p = _pad_cast_2d(adj, n_row_pad, n_col_pad, in_dtype)
    w_p = _pad_cast_2d(weight, f_in, f_out_pad, in_dtype)
    if bias is None:
        b_p = jnp.zeros((1, f_out_pad), jnp.float32)
    else:
        b_p = _pad_cast_2d(jnp.asarray(bias, jnp.float32).reshape(1, f_out),
                           1, f_out_pad, jnp.float32)

    # ---- pass 1: support = x @ W ----
    sup_row_tile = math.gcd(512, n_col_pad)   # divides n_col_pad, multiple of 128
    sup_cost = pl.CostEstimate(
        flops=2 * n_col_pad * f_in * f_out_pad,
        transcendentals=0,
        bytes_accessed=int(n_col_pad * f_in * itm_in
                           + f_in * f_out_pad * itm_in
                           + n_col_pad * f_out_pad * itm_sup),
    )
    support = pl.pallas_call(
        _support_kernel,
        out_shape=jax.ShapeDtypeStruct((n_col_pad, f_out_pad), sup_dtype),
        grid_spec=pltpu.PrefetchScalarGridSpec(
            num_scalar_prefetch=0,
            grid=(n_col_pad // sup_row_tile,),
            in_specs=[
                pl.BlockSpec((sup_row_tile, f_in), lambda i: (i, 0)),   # x rows
                pl.BlockSpec((f_in, f_out_pad), lambda i: (0, 0)),      # weight
            ],
            out_specs=pl.BlockSpec((sup_row_tile, f_out_pad), lambda i: (i, 0)),
        ),
        compiler_params=pltpu.CompilerParams(
            dimension_semantics=("parallel",),
        ),
        cost_estimate=sup_cost,
    )(x_p, w_p)

    # ---- pass 2: out = adj @ support + bias ----
    grid = (n_row_pad // row_tile, n_col_pad // k_tile)

    # Generation-aware VMEM budget (leave headroom for compiler scratch).
    try:
        vmem_cap = int(pltpu.get_tpu_info().vmem_capacity_bytes)
    except Exception:
        vmem_cap = 64 << 20
    vmem_budget = (vmem_cap * 3) // 4

    sup_bytes_total = n_col_pad * f_out_pad * itm_sup
    if support_resident is None:
        # ~8 MiB on v7x, ~16 MiB on v5e/v6e.
        support_resident = sup_bytes_total <= vmem_cap // 8
    support_resident = bool(support_resident)

    acc_in_out = out_dtype == jnp.dtype(jnp.float32)

    if support_resident:
        sup_spec = pl.BlockSpec((n_col_pad, f_out_pad), lambda i, k: (0, 0))
        sup_vmem = 2 * sup_bytes_total
        sup_hbm = sup_bytes_total                      # fetched from HBM once
    else:
        sup_spec = pl.BlockSpec((k_tile, f_out_pad), lambda i, k: (k, 0))
        sup_vmem = 2 * k_tile * f_out_pad * itm_sup
        sup_hbm = grid[0] * sup_bytes_total            # re-streamed per row tile

    vmem_est = (2 * row_tile * k_tile * itm_in          # adj tiles (double-buffered)
                + sup_vmem                              # support
                + 2 * row_tile * f_out_pad * itm_out    # output tiles
                + (0 if acc_in_out else row_tile * f_out_pad * 4)
                + 2 * f_out_pad * 4)                    # bias
    vmem_limit = int(min(max(2 * vmem_est, 16 << 20), vmem_budget))

    main_cost = pl.CostEstimate(
        flops=2 * n_row_pad * n_col_pad * f_out_pad,
        transcendentals=0,
        bytes_accessed=int(n_row_pad * n_col_pad * itm_in + sup_hbm
                           + n_row_pad * f_out_pad * itm_out + f_out_pad * 4),
    )

    scratch_shapes = ([] if acc_in_out
                      else [pltpu.VMEM((row_tile, f_out_pad), jnp.float32)])

    out_p = pl.pallas_call(
        _make_gcn_kernel(k_tile, support_resident, acc_in_out),
        out_shape=jax.ShapeDtypeStruct((n_row_pad, f_out_pad), out_dtype),
        grid_spec=pltpu.PrefetchScalarGridSpec(
            num_scalar_prefetch=0,
            grid=grid,
            in_specs=[
                pl.BlockSpec((row_tile, k_tile), lambda i, k: (i, k)),   # adj tile
                sup_spec,                                                # support
                pl.BlockSpec((1, f_out_pad), lambda i, k: (0, 0)),       # bias
            ],
            out_specs=pl.BlockSpec((row_tile, f_out_pad), lambda i, k: (i, 0)),
            scratch_shapes=scratch_shapes,
        ),
        compiler_params=pltpu.CompilerParams(
            dimension_semantics=("parallel", "arbitrary"),
            vmem_limit_bytes=vmem_limit,
        ),
        cost_estimate=main_cost,
    )(adj_p, support, b_p)

    return out_p[:n, :f_out]


if __name__ == "__main__":
    dtype = jnp.float32
    key = jax.random.PRNGKey(0)
    k_x, k_adj, k_w, k_b = jax.random.split(key, 4)

    # ---- case 1: exact-f32 path, tile-aligned N, with bias ----
    N, F_IN, F_OUT = 128, 64, 32
    stdv = 1.0 / math.sqrt(F_OUT)
    weight = jax.random.uniform(k_w, (F_IN, F_OUT), dtype, minval=-stdv, maxval=stdv)
    bias = jax.random.uniform(k_b, (F_OUT,), dtype, minval=-stdv, maxval=stdv)
    x = jax.random.normal(k_x, (N, F_IN), dtype)
    adj = jax.random.uniform(k_adj, (N, N), dtype)
    adj = adj / jnp.sum(adj, axis=1, keepdims=True)   # row-normalized adjacency

    out = jax.block_until_ready(
        graph_convolution(x, adj, weight, bias, compute_dtype=jnp.float32))
    ref = adj @ (x @ weight) + bias
    assert out.shape == (N, F_OUT)
    assert jnp.allclose(out, ref, atol=1e-4, rtol=1e-4), "mismatch (case 1, f32)"

    # ---- case 2: default bf16 path, non-tile-multiple N, no bias ----
    N2, F_IN2, F_OUT2 = 200, 48, 40
    k_x2, k_adj2, k_w2 = jax.random.split(jax.random.PRNGKey(1), 3)
    stdv2 = 1.0 / math.sqrt(F_OUT2)
    w2 = jax.random.uniform(k_w2, (F_IN2, F_OUT2), dtype, minval=-stdv2, maxval=stdv2)
    x2 = jax.random.normal(k_x2, (N2, F_IN2), dtype)
    adj2 = jax.random.uniform(k_adj2, (N2, N2), dtype)
    adj2 = adj2 / jnp.sum(adj2, axis=1, keepdims=True)

    out2 = jax.block_until_ready(graph_convolution(x2, adj2, w2, None))
    ref2 = adj2 @ (x2 @ w2)
    assert out2.shape == (N2, F_OUT2)
    assert jnp.allclose(out2, ref2, atol=3e-2, rtol=3e-2), "mismatch (case 2, bf16)"

    # ---- case 3: forced streamed-support path (fallback for huge N) ----
    out3 = jax.block_until_ready(
        graph_convolution(x, adj, weight, bias,
                          compute_dtype=jnp.float32, support_resident=False))
    assert jnp.allclose(out3, ref, atol=1e-4, rtol=1e-4), "mismatch (case 3, streamed)"

    print("KERNEL_OK")
</pallas_src>

<mosaic_0001>
module attributes {stable_mosaic.version = 11 : i64} {
  func.func @_support_kernel(%arg0: i32, %arg1: memref<128x64xf32, #tpu.memory_space<vmem>>, %arg2: memref<64x128xf32, #tpu.memory_space<vmem>>, %arg3: memref<128x128xf32, #tpu.memory_space<vmem>>) attributes {dimension_semantics = [#tpu.dimension_semantics<parallel>], iteration_bounds = array<i64: 1>, scalar_prefetch = 0 : i64, scratch_operands = 0 : i64, tpu.core_type = #tpu.core_type<tc>, window_params = [{transform_indices = @transform_0, window_bounds = array<i64: 128, 64>}, {pipeline_mode = #tpu.pipeline_mode<synchronous>, transform_indices = @transform_1, window_bounds = array<i64: 64, 128>}, {transform_indices = @transform_2, window_bounds = array<i64: 128, 128>}]} {
    %c0 = arith.constant 0 : index
    %c0_0 = arith.constant 0 : index
    %0 = vector.load %arg1[%c0, %c0_0] : memref<128x64xf32, #tpu.memory_space<vmem>>, vector<128x64xf32>
    %c0_1 = arith.constant 0 : index
    %c0_2 = arith.constant 0 : index
    %1 = vector.load %arg2[%c0_1, %c0_2] : memref<64x128xf32, #tpu.memory_space<vmem>>, vector<64x128xf32>
    %cst = arith.constant dense<0.000000e+00> : vector<128x128xf32>
    %2 = tpu.matmul %0, %1, %cst {dimension_numbers = #tpu.dot_dimension_numbers<[1], [0], [0], [1], [0, 0, 1, 1], [], []>} : vector<128x64xf32>, vector<64x128xf32>, vector<128x128xf32> -> vector<128x128xf32>
    %c0_3 = arith.constant 0 : index
    %c0_4 = arith.constant 0 : index
    %3 = vector.load %arg3[%c0_3, %c0_4] : memref<128x128xf32, #tpu.memory_space<vmem>>, vector<128x128xf32>
    tpu.vector_store %arg3[%c0_3, %c0_4], %2 {strides = array<i32>} : memref<128x128xf32, #tpu.memory_space<vmem>>, vector<128x128xf32>,
    return
  }
  func.func @transform_0(%arg0: i32) -> (i32, i32) {
    %c0_i32 = arith.constant 0 : i32
    %c0_i32_0 = arith.constant 0 : i32
    return %arg0, %c0_i32 : i32, i32
  }
  func.func @transform_1(%arg0: i32) -> (i32, i32) {
    %c0_i32 = arith.constant 0 : i32
    %c0_i32_0 = arith.constant 0 : i32
    %c0_i32_1 = arith.constant 0 : i32
    return %c0_i32, %c0_i32_0 : i32, i32
  }
  func.func @transform_2(%arg0: i32) -> (i32, i32) {
    %c0_i32 = arith.constant 0 : i32
    %c0_i32_0 = arith.constant 0 : i32
    return %arg0, %c0_i32 : i32, i32
  }
}

</mosaic_0001>

<bundles_post_ra>
// kernel: tpu_custom_call.1
= control target key start
LH: loop header
LB: loop body
LE: loop exit
PB: predicated region body
PF: predicated region fallthrough
CT: control target
= control target key end

     0   :  { %s492_s0 = inlined_call_operand.vmem [shape: f32[128,64], index: 0, kind: input, shape index: {}]   ;;  %s493_s1 = inlined_call_operand.vmem [shape: f32[64,128], index: 1, kind: input, shape index: {}]   ;;  %s494_s2 = inlined_call_operand.hbm [shape: f32[128,128], index: 2, kind: output, shape index: {}]  }
   0x1   :  { %v35_v0 = vld [vmem:[%s493_s1 + $0x38] sm:$0xff]  ;;  %v34_v1 = vld [vmem:[%s493_s1 + $0x30] sm:$0xff]  ;;  %v33_v2 = vld [vmem:[%s493_s1 + $0x28] sm:$0xff] }
   0x2   :  { %302 = vmatprep.subr.mxu0 %v35_v0  ;;  %342 = vmatprep.subr.mxu1 %v35_v0  ;;  %v32_v3 = vld [vmem:[%s493_s1 + $0x20] sm:$0xff]  ;;  %v31_v4 = vld [vmem:[%s493_s1 + $0x18] sm:$0xff]  ;;  %v30_v5 = vld [vmem:[%s493_s1 + $0x10] sm:$0xff] }
   0x3   :  { %303 = vmatpush3.msra.mxu0 %v35_v0  ;;  %350 = vmatpush3.msra.mxu1 %v35_v0 }
   0x4   :  { %304 = vmatprep.subr.mxu0 %v34_v1  ;;  %343 = vmatprep.subr.mxu1 %v34_v1 }
   0x5   :  { %305 = vmatpush3.msra.mxu0 %v34_v1  ;;  %351 = vmatpush3.msra.mxu1 %v34_v1 }
   0x6   :  { %306 = vmatprep.subr.mxu0 %v33_v2  ;;  %344 = vmatprep.subr.mxu1 %v33_v2 }
   0x7   :  { %307 = vmatpush3.msra.mxu0 %v33_v2  ;;  %352 = vmatpush3.msra.mxu1 %v33_v2 }
   0x8   :  { %308 = vmatprep.subr.mxu0 %v32_v3  ;;  %345 = vmatprep.subr.mxu1 %v32_v3 }
   0x9   :  { %309 = vmatpush3.msra.mxu0 %v32_v3  ;;  %353 = vmatpush3.msra.mxu1 %v32_v3 }
   0xa   :  { %7 = vsyncpa [#allocation3], 0  ;;  %310 = vmatprep.subr.mxu0 %v31_v4  ;;  %346 = vmatprep.subr.mxu1 %v31_v4  ;;  %v29_v6 = vld [vmem:[%s493_s1 + $0x8] sm:$0xff]  ;;  %v28_v7 = vld [vmem:[%s493_s1] sm:$0xff]  ;;  %vm36_vm0 = vcmask 523264  }
   0xb   :  { %311 = vmatpush3.msra.mxu0 %v31_v4  ;;  %354 = vmatpush3.msra.mxu1 %v31_v4  ;;  %v12_v8 = vld [vmem:[%s492_s0] sm:$0xff]  ;;  %v13_v10 = vld [vmem:[%s492_s0 + $0x8] sm:$0xff]  ;;  %v14_v12 = vld [vmem:[%s492_s0 + $0x10] sm:$0xff] }
   0xc   :  { %312 = vmatprep.subr.mxu0 %v30_v5  ;;  %347 = vmatprep.subr.mxu1 %v30_v5  ;;  %v20_v9 = vld [vmem:[%s492_s0 + $0x40] sm:$0xff]  ;;  %v21_v11 = vld [vmem:[%s492_s0 + $0x48] sm:$0xff]  ;;  %v22_v13 = vld [vmem:[%s492_s0 + $0x50] sm:$0xff] }
   0xd   :  { %313 = vmatpush3.msra.mxu0 %v30_v5  ;;  %355 = vmatpush3.msra.mxu1 %v30_v5  ;;  %v15_v14 = vld [vmem:[%s492_s0 + $0x18] sm:$0xff]  ;;  %v16_v16 = vld [vmem:[%s492_s0 + $0x20] sm:$0xff]  ;;  %v17_v18 = vld [vmem:[%s492_s0 + $0x28] sm:$0xff] }
   0xe   :  { %314 = vmatprep.subr.mxu0 %v29_v6  ;;  %348 = vmatprep.subr.mxu1 %v29_v6  ;;  %v23_v15 = vld [vmem:[%s492_s0 + $0x58] sm:$0xff]  ;;  %v24_v17 = vld [vmem:[%s492_s0 + $0x60] sm:$0xff]  ;;  %v25_v19 = vld [vmem:[%s492_s0 + $0x68] sm:$0xff] }
   0xf   :  { %315 = vmatpush3.msra.mxu0 %v29_v6  ;;  %356 = vmatpush3.msra.mxu1 %v29_v6  ;;  %v18_v20 = vld [vmem:[%s492_s0 + $0x30] sm:$0xff]  ;;  %v19_v22 = vld [vmem:[%s492_s0 + $0x38] sm:$0xff] }
  0x10   :  { %316 = vmatprep.subr.mxu0 %v28_v7  ;;  %349 = vmatprep.subr.mxu1 %v28_v7  ;;  %v26_v21 = vld [vmem:[%s492_s0 + $0x70] sm:$0xff]  ;;  %v27_v23 = vld [vmem:[%s492_s0 + $0x78] sm:$0xff]  ;;  %s383_s0 = smov [#allocation2]  }
  0x11   :  { %317 = vmatpush3.msra.mxu0 %v28_v7  ;;  %357 = vmatpush3.msra.mxu1 %v28_v7  ;;  %s251_s28 = sshll.u32 %s383_s0, 4  ;;  %s252_s28 = int_to_ptr.vmem [resolvable:$true] %s251_s28 }
  0x12   :  { %318 = vmatprep.mubr.msk.f32.mxu0 %vm36_vm0, %v12_v8  ;;  %330 = vmatprep.mubr.msk.f32.mxu1 %vm36_vm0, %v20_v9  ;;  %s361_s29 = scalar_lea.vmem %s252_s28, 2048  ;;  %p366_p1 = scmp.lt.s32.totalorder %s252_s28, %s252_s28 }
  0x13   :  { %319 = vmatmul.mubr.msk.f32.vlgmr.msra.gmra.mxu0 %vm36_vm0, %v13_v10  ;;  %331 = vmatmul.mubr.msk.f32.vlgmr.msra.gmra.mxu1 %vm36_vm0, %v21_v11  ;;  %p362_p0 = scmp.ne.s32.totalorder %s252_s28, %s361_s29  ;;  %p367_p2 = scmp.lt.s32.totalorder %s361_s29, %s361_s29 }
  0x14   :  { %321 = vmatprep.mubr.msk.f32.mxu0 %vm36_vm0, %v14_v12  ;;  %333 = vmatprep.mubr.msk.f32.mxu1 %vm36_vm0, %v22_v13 }
  0x15   :  { %p368_p3 = por %p367_p2, %p366_p1 }
  0x17   :  { %322 = vmatmul.mubr.msk.f32.gmra.mxu0 %vm36_vm0, %v15_v14  ;;  %334 = vmatmul.mubr.msk.f32.gmra.mxu1 %vm36_vm0, %v23_v15  ;;  %p369_p4 = pnand %p368_p3, %p362_p0 }
  0x18   :  { %324 = vmatprep.mubr.msk.f32.mxu0 %vm36_vm0, %v16_v16  ;;  %336 = vmatprep.mubr.msk.f32.mxu1 %vm36_vm0, %v24_v17 }
  0x1b   :  { %325 = vmatmul.mubr.msk.f32.gmra.mxu0 %vm36_vm0, %v17_v18  ;;  %337 = vmatmul.mubr.msk.f32.gmra.mxu1 %vm36_vm0, %v25_v19 }
  0x1c   :  { %327 = vmatprep.mubr.msk.f32.mxu0 %vm36_vm0, %v18_v20  ;;  %339 = vmatprep.mubr.msk.f32.mxu1 %vm36_vm0, %v26_v21 }
  0x1f   :  { %328 = vmatmul.mubr.msk.f32.gmra.mxu0 %vm36_vm0, %v19_v22  ;;  %340 = vmatmul.mubr.msk.f32.gmra.mxu1 %vm36_vm0, %v27_v23 }
  0xd3   :  { %v320_v24 = vpop.f32.mrf.mxu0  ;;  %v332_v25 = vpop.f32.mrf.mxu1 }
  0xd4   :  { %231 = vst [vmem:[#allocation2 + $0x8] sm:$0xff] %v320_v24  ;;  %239 = vst [vmem:[#allocation2 + $0x48] sm:$0xff] %v332_v25 }
  0xd5   :  { %v151_v26 = vpop.f32.mrf.mxu0  ;;  %v191_v27 = vpop.f32.mrf.mxu1 }
  0xd6   :  { %230 = vst [vmem:[#allocation2] sm:$0xff] %v151_v26  ;;  %238 = vst [vmem:[#allocation2 + $0x40] sm:$0xff] %v191_v27 }
  0xd7   :  { %v323_v28 = vpop.f32.mrf.mxu0  ;;  %v335_v29 = vpop.f32.mrf.mxu1 }
  0xd8   :  { %233 = vst [vmem:[#allocation2 + $0x18] sm:$0xff] %v323_v28  ;;  %241 = vst [vmem:[#allocation2 + $0x58] sm:$0xff] %v335_v29 }
  0xd9   :  { %v161_v30 = vpop.f32.mrf.mxu0  ;;  %v201_v31 = vpop.f32.mrf.mxu1 }
  0xda   :  { %232 = vst [vmem:[#allocation2 + $0x10] sm:$0xff] %v161_v30  ;;  %240 = vst [vmem:[#allocation2 + $0x50] sm:$0xff] %v201_v31 }
  0xdb   :  { %v326_v32 = vpop.f32.mrf.mxu0  ;;  %v338_v33 = vpop.f32.mrf.mxu1 }
  0xdc   :  { %235 = vst [vmem:[#allocation2 + $0x28] sm:$0xff] %v326_v32  ;;  %243 = vst [vmem:[#allocation2 + $0x68] sm:$0xff] %v338_v33 }
  0xdd   :  { %v171_v34 = vpop.f32.mrf.mxu0  ;;  %v211_v35 = vpop.f32.mrf.mxu1 }
  0xde   :  { %234 = vst [vmem:[#allocation2 + $0x20] sm:$0xff] %v171_v34  ;;  %242 = vst [vmem:[#allocation2 + $0x60] sm:$0xff] %v211_v35 }
  0xdf   :  { %v329_v36 = vpop.f32.mrf.mxu0  ;;  %v341_v37 = vpop.f32.mrf.mxu1 }
  0xe0   :  { %237 = vst [vmem:[#allocation2 + $0x38] sm:$0xff] %v329_v36  ;;  %245 = vst [vmem:[#allocation2 + $0x78] sm:$0xff] %v341_v37 }
  0xe1   :  { %v181_v38 = vpop.f32.mrf.mxu0  ;;  %v221_v39 = vpop.f32.mrf.mxu1 }
  0xe2   :  { %236 = vst [vmem:[#allocation2 + $0x30] sm:$0xff] %v181_v38  ;;  %244 = vst [vmem:[#allocation2 + $0x70] sm:$0xff] %v221_v39 }
  0xe3   :  { %372 = shalt.err (!%p369_p4)
}
  0xe4   :  { %s384_s30 = smov 128   ;;  %s385_s1 = smov 8  }
  0xe5   :  { %257 = dma.vmem_to_hbm [thread:$0]  %s252_s28, 2048, %s494_s2, [#allocation3], %s384_s30, %s384_s30, %s385_s1  }
  0xe6   :  { %381 = dma.done.wait [#allocation3], 2048  }
  0xe7   :  { %382 = vsyncadd [#allocation3], 4294965248 }
  0xe8   :  { %261 = vsyncpa [#allocation3], 1 }

</bundles_post_ra>
